<compile_context>
chip_gen: v7x
topology: tpu7x:2x2x1
jax: 0.10.0
libtpu: 0.0.40
codegen_flags: <defaults>
</compile_context>

<pallas_src>
import jax
import jax.numpy as jnp
import numpy as np
from jax import lax
from jax.experimental import pallas as pl
from jax.experimental.pallas import tpu as pltpu


# ---------------------------------------------------------------------------
# Kernel factories: each grid step handles an independent (row_tile, C) block and
# writes its partial sum(s) broadcast into a lane-dense (1, 8, 128) output tile.
# Static config (true N, row_tile, label smoothing) is closed over, not traced.
# ---------------------------------------------------------------------------

def _make_unweighted_kernel(n_rows, row_tile, label_smoothing_value, ragged):
    ls = float(label_smoothing_value)

    def kernel(pred_ref, tgt_ref, out_ref):
        x = pred_ref[...].astype(jnp.float32)
        t = tgt_ref[...].astype(jnp.float32)
        tb, c = x.shape

        if ragged:
            # Mask rows past the true batch (last block overhangs; its garbage
            # logits must not reach max/exp/sum — NaN/Inf would poison the sums).
            row0 = pl.program_id(0) * row_tile
            rid = row0 + lax.broadcasted_iota(jnp.int32, (tb, c), 0)
            valid = rid < n_rows
            x = jnp.where(valid, x, 0.0)
            t = jnp.where(valid, t, 0.0)

        if ls > 0.0:
            # Fused label smoothing: vectorized equivalent of the per-sample
            # python loop in the PyTorch module, on the tile already in VMEM.
            pos = t > 0.0
            pos_count = jnp.sum(pos.astype(jnp.float32), axis=1, keepdims=True)
            neg_p = ls / jnp.maximum(jnp.float32(c) - pos_count, 1.0)
            pos_p = ls / jnp.maximum(pos_count, 1.0)
            t_sm = t + jnp.where(pos, -pos_p, neg_p)
            t = jnp.where(pos_count > 0.0, t_sm, t)   # rows w/o positives untouched

        m = jnp.max(x, axis=1, keepdims=True)
        lse = jnp.log(jnp.sum(jnp.exp(x - m), axis=1, keepdims=True)) + m
        log_softmax = x - lse

        # Row-wise (lane/XLU) reduce first, then cross-row, for better rounding
        # behavior with large row tiles.
        num = jnp.sum(jnp.sum(-t * log_softmax, axis=1, keepdims=True))
        den = jnp.sum(jnp.sum(t, axis=1, keepdims=True))

        # Pack both partials into one lane-dense tile: num -> sublanes 0..3,
        # den -> sublanes 4..7 (single output DMA per step).
        sub = lax.broadcasted_iota(jnp.int32, out_ref.shape, 1)
        out_ref[...] = jnp.where(sub < 4, num, den)

    return kernel


def _make_weighted_kernel(n_rows, row_tile, ragged):
    def kernel(w_ref, pred_ref, tgt_ref, out_ref):
        x = pred_ref[...].astype(jnp.float32)
        t = tgt_ref[...].astype(jnp.float32)
        w = w_ref[...].astype(jnp.float32)   # (1, C), broadcast by jnp.where
        tb, c = x.shape

        if ragged:
            row0 = pl.program_id(0) * row_tile
            rid = row0 + lax.broadcasted_iota(jnp.int32, (tb, c), 0)
            valid = rid < n_rows
            x = jnp.where(valid, x, 0.0)
            t = jnp.where(valid, t, 0.0)

        m = jnp.max(x, axis=1, keepdims=True)
        lse = jnp.log(jnp.sum(jnp.exp(x - m), axis=1, keepdims=True)) + m
        log_softmax = x - lse

        # th.where(soft_targets > 0, class_weight_matrix, soft_targets)
        used_w = jnp.where(t > 0.0, w, t)                          # (TB, C)
        samples_weight = jnp.max(used_w, axis=1, keepdims=True)    # (TB, 1)

        partial = jnp.sum(jnp.sum(-samples_weight * t * log_softmax,
                                  axis=1, keepdims=True))
        out_ref[...] = jnp.full(out_ref.shape, partial, dtype=jnp.float32)

    return kernel


# ---------------------------------------------------------------------------
# Wrapper-side glue
# ---------------------------------------------------------------------------

def _default_vmem_limit():
    """~75% of physical VMEM (v6e/v5e -> 96 MiB, v7x -> 48 MiB); safe fallback."""
    try:
        cap = getattr(pltpu.get_tpu_info(), "vmem_capacity_bytes", None)
    except Exception:
        cap = None
    if not cap:
        return 32 * 1024 * 1024
    return int(min(cap * 3 // 4, 96 * 1024 * 1024))


def _pick_row_tile(n, c, pred_dtype, tgt_dtype, vmem_limit_bytes):
    """Largest sublane-aligned row tile that fits the scoped-VMEM budget.

    Budgets double-buffered input tiles PLUS ~6 f32 tile-sized in-kernel
    temporaries (upcast x/t, mask, exp, log_softmax, product), and clamps so the
    'parallel' batch axis keeps >= 2 blocks (v7x megacore) whenever each half
    still moves a multi-MiB pred tile.
    """
    pred_b = jnp.dtype(pred_dtype).itemsize
    tgt_b = jnp.dtype(tgt_dtype).itemsize
    per_row = 2 * c * (pred_b + tgt_b) + 6 * c * 4
    budget = int(vmem_limit_bytes * 3 // 4)
    rt = budget // max(per_row, 1)

    n8 = ((n + 7) // 8) * 8
    rt = min(rt, n8)

    # Keep >= 2 grid blocks for megacore sharding when splitting still leaves
    # each block with >= ~2 MiB of pred DMA per step.
    rows_for_2mib = max(8, (2 * 1024 * 1024 + c * pred_b - 1) // (c * pred_b))
    if n8 >= 2 * rows_for_2mib:
        half = (((n8 + 1) // 2) + 7) // 8 * 8
        rt = min(rt, half)

    rt = max(8, (rt // 8) * 8)
    return int(rt)


def multi_softmax_cross_entropy_loss(pred, soft_targets, class_weight=None,
                                     label_smoothing_value=0.0, *,
                                     row_tile=None, vmem_limit_bytes=None):
    """pred, soft_targets: (N, C) arrays (f32 or bf16). Returns a scalar f32 loss.

    Notes:
      * An all-zero target batch (unweighted path) yields 0/0 = NaN, matching the
        PyTorch module.
      * For v5e, prefer bf16 for BOTH pred and soft_targets from the producer;
        this kernel upcasts to f32 in VMEM (bandwidth is the only bottleneck).
    """
    n, c = pred.shape
    assert soft_targets.shape == (n, c)

    if vmem_limit_bytes is None:
        vmem_limit_bytes = _default_vmem_limit()
    if row_tile is None:
        row_tile = _pick_row_tile(n, c, pred.dtype, soft_targets.dtype,
                                  vmem_limit_bytes)
    assert row_tile % 8 == 0, "row_tile must be sublane-aligned (multiple of 8)"

    num_blocks = pl.cdiv(n, row_tile)
    ragged = (n % row_tile) != 0   # last block overhangs -> mask rows in-kernel

    compiler_params = pltpu.CompilerParams(
        dimension_semantics=("parallel",),
        vmem_limit_bytes=vmem_limit_bytes,
    )
    part_shape = jax.ShapeDtypeStruct((num_blocks, 8, 128), jnp.float32)
    part_spec = pl.BlockSpec((1, 8, 128), lambda i: (i, 0, 0))
    pred_spec = pl.BlockSpec((row_tile, c), lambda i: (i, 0))
    tgt_spec = pl.BlockSpec((row_tile, c), lambda i: (i, 0))

    if class_weight is not None:
        w2d = jnp.reshape(class_weight.astype(jnp.float32), (1, c))
        partials = pl.pallas_call(
            _make_weighted_kernel(n, row_tile, ragged),
            out_shape=part_shape,
            grid_spec=pltpu.PrefetchScalarGridSpec(
                num_scalar_prefetch=0,
                grid=(num_blocks,),
                in_specs=[
                    pl.BlockSpec((1, c), lambda i: (0, 0)),   # class_weight
                    pred_spec,                                 # pred
                    tgt_spec,                                  # targets
                ],
                out_specs=part_spec,
            ),
            compiler_params=compiler_params,
        )(w2d, pred, soft_targets)
        # Whole-slab sum / broadcast factor, then mean over the TRUE batch size
        # (masked rows contribute exactly 0).
        return jnp.sum(partials) / jnp.float32(8 * 128) / jnp.float32(n)

    partials = pl.pallas_call(
        _make_unweighted_kernel(n, row_tile, label_smoothing_value, ragged),
        out_shape=part_shape,
        grid_spec=pltpu.PrefetchScalarGridSpec(
            num_scalar_prefetch=0,
            grid=(num_blocks,),
            in_specs=[pred_spec, tgt_spec],
            out_specs=part_spec,
        ),
        compiler_params=compiler_params,
    )(pred, soft_targets)
    # num packed into sublanes 0..3, den into 4..7; contiguous slab sums (no
    # strided one-element gather), divided by the broadcast factor.
    num_total = jnp.sum(partials[:, :4, :]) / jnp.float32(4 * 128)
    den_total = jnp.sum(partials[:, 4:, :]) / jnp.float32(4 * 128)
    # Like PyTorch, an all-zero target batch yields 0/0 = NaN here.
    return num_total / den_total


# ---------------------------------------------------------------------------
# Pure-JAX reference (mirrors the PyTorch module)
# ---------------------------------------------------------------------------

def _apply_label_smoothing_ref(t, ls_value):
    _, c = t.shape
    pos = t > 0
    pos_count = jnp.sum(pos, axis=1, keepdims=True).astype(jnp.float32)
    neg_p = ls_value / jnp.maximum(jnp.float32(c) - pos_count, 1.0)
    pos_p = ls_value / jnp.maximum(pos_count, 1.0)
    t_new = t + jnp.where(pos, -pos_p, neg_p)
    return jnp.where(pos_count > 0, t_new, t)


def _reference(pred, soft_targets, class_weight=None, label_smoothing_value=0.0):
    pred = pred.astype(jnp.float32)
    t = soft_targets.astype(jnp.float32)
    lsm = jax.nn.log_softmax(pred, axis=1)
    if class_weight is not None:
        used = jnp.where(t > 0, class_weight[None, :].astype(jnp.float32), t)
        sw = jnp.max(used, axis=1, keepdims=True)
        return jnp.mean(jnp.sum(-sw * t * lsm, axis=1), axis=0)
    if label_smoothing_value > 0:
        t = _apply_label_smoothing_ref(t, float(label_smoothing_value))
    return jnp.sum(-t * lsm) / jnp.sum(t)


if __name__ == "__main__":
    key = jax.random.PRNGKey(0)
    k1, k2, k3 = jax.random.split(key, 3)

    N, C = 16, 128  # small: batch=16, classes=128
    pred = jax.random.normal(k1, (N, C), dtype=jnp.float32)
    # soft targets: sparse non-negative, normalized per row
    raw = jax.random.uniform(k2, (N, C), dtype=jnp.float32)
    tgt = jnp.where(raw > 0.9, raw, 0.0)
    tgt = tgt / jnp.maximum(jnp.sum(tgt, axis=1, keepdims=True), 1e-6)
    class_weight = 0.5 + jax.random.uniform(k3, (C,), dtype=jnp.float32)

    N_odd = 13
    pred_bf16 = pred.astype(jnp.bfloat16)

    cases = [
        # (got, want, tol)
        (multi_softmax_cross_entropy_loss(pred, tgt),
         _reference(pred, tgt), 1e-4),
        (multi_softmax_cross_entropy_loss(pred, tgt, class_weight=class_weight),
         _reference(pred, tgt, class_weight=class_weight), 1e-4),
        (multi_softmax_cross_entropy_loss(pred, tgt, label_smoothing_value=0.1),
         _reference(pred, tgt, label_smoothing_value=0.1), 1e-4),
        # ragged batch (no wrapper pad, in-kernel row masking), multi-block grid
        (multi_softmax_cross_entropy_loss(pred[:N_odd], tgt[:N_odd], row_tile=8),
         _reference(pred[:N_odd], tgt[:N_odd]), 1e-4),
        (multi_softmax_cross_entropy_loss(pred[:N_odd], tgt[:N_odd],
                                          class_weight=class_weight, row_tile=8),
         _reference(pred[:N_odd], tgt[:N_odd], class_weight=class_weight), 1e-4),
        (multi_softmax_cross_entropy_loss(pred[:N_odd], tgt[:N_odd],
                                          label_smoothing_value=0.1, row_tile=8),
         _reference(pred[:N_odd], tgt[:N_odd], label_smoothing_value=0.1), 1e-4),
        # bf16 predictions (halved HBM traffic; f32 math inside the kernel)
        (multi_softmax_cross_entropy_loss(pred_bf16, tgt),
         _reference(pred_bf16, tgt), 1e-3),
    ]

    jax.block_until_ready([g for g, _, _ in cases])

    for i, (got, want, tol) in enumerate(cases):
        assert np.allclose(np.asarray(got), np.asarray(want),
                           rtol=tol, atol=tol), (i, got, want)

    print("KERNEL_OK")
</pallas_src>

<mosaic_0001>
module attributes {stable_mosaic.version = 11 : i64} {
  func.func @kernel(%arg0: i32, %arg1: memref<16x128xf32, #tpu.memory_space<vmem>>, %arg2: memref<16x128xf32, #tpu.memory_space<vmem>>, %arg3: memref<1x8x128xf32, #tpu.memory_space<vmem>>) attributes {dimension_semantics = [#tpu.dimension_semantics<parallel>], iteration_bounds = array<i64: 1>, scalar_prefetch = 0 : i64, scratch_operands = 0 : i64, tpu.core_type = #tpu.core_type<tc>, window_params = [{transform_indices = @transform_0, window_bounds = array<i64: 16, 128>}, {transform_indices = @transform_1, window_bounds = array<i64: 16, 128>}, {transform_indices = @transform_2, window_bounds = array<i64: 1, 8, 128>}]} {
    %c0 = arith.constant 0 : index
    %c0_0 = arith.constant 0 : index
    %0 = vector.load %arg1[%c0, %c0_0] : memref<16x128xf32, #tpu.memory_space<vmem>>, vector<16x128xf32>
    %c0_1 = arith.constant 0 : index
    %c0_2 = arith.constant 0 : index
    %1 = vector.load %arg2[%c0_1, %c0_2] : memref<16x128xf32, #tpu.memory_space<vmem>>, vector<16x128xf32>
    %cst = arith.constant dense<0xFF800000> : vector<16xf32>
    %2 = vector.multi_reduction <maximumf>, %0, %cst [1] : vector<16x128xf32> to vector<16xf32>
    %3 = vector.shape_cast %2 : vector<16xf32> to vector<16x1xf32>
    %4 = vector.broadcast %3 : vector<16x1xf32> to vector<16x128xf32>
    %5 = arith.subf %0, %4 : vector<16x128xf32>
    %6 = math.exp %5 : vector<16x128xf32>
    %cst_3 = arith.constant dense<0.000000e+00> : vector<16xf32>
    %7 = vector.multi_reduction <add>, %6, %cst_3 [1] : vector<16x128xf32> to vector<16xf32>
    %8 = vector.shape_cast %7 : vector<16xf32> to vector<16x1xf32>
    %9 = math.log %8 : vector<16x1xf32>
    %10 = arith.addf %9, %3 : vector<16x1xf32>
    %11 = vector.broadcast %10 : vector<16x1xf32> to vector<16x128xf32>
    %12 = arith.subf %0, %11 : vector<16x128xf32>
    %cst_4 = arith.constant 0.000000e+00 : f32
    %13 = vector.broadcast %cst_4 : f32 to vector<16x128xf32>
    %14 = arith.subf %13, %1 : vector<16x128xf32>
    %15 = arith.mulf %14, %12 : vector<16x128xf32>
    %cst_5 = arith.constant dense<0.000000e+00> : vector<16xf32>
    %16 = vector.multi_reduction <add>, %15, %cst_5 [1] : vector<16x128xf32> to vector<16xf32>
    %17 = vector.shape_cast %16 : vector<16xf32> to vector<16x1xf32>
    %18 = vector.shape_cast %17 : vector<16x1xf32> to vector<1x16x1xf32>
    %cst_6 = arith.constant dense<0.000000e+00> : vector<1xf32>
    %19 = vector.multi_reduction <add>, %18, %cst_6 [1, 2] : vector<1x16x1xf32> to vector<1xf32>
    %20 = vector.shape_cast %19 : vector<1xf32> to vector<1x1x1xf32>
    %21 = vector.extract %20[0, 0, 0] : f32 from vector<1x1x1xf32>
    %cst_7 = arith.constant dense<0.000000e+00> : vector<16xf32>
    %22 = vector.multi_reduction <add>, %1, %cst_7 [1] : vector<16x128xf32> to vector<16xf32>
    %23 = vector.shape_cast %22 : vector<16xf32> to vector<16x1xf32>
    %24 = vector.shape_cast %23 : vector<16x1xf32> to vector<1x16x1xf32>
    %cst_8 = arith.constant dense<0.000000e+00> : vector<1xf32>
    %25 = vector.multi_reduction <add>, %24, %cst_8 [1, 2] : vector<1x16x1xf32> to vector<1xf32>
    %26 = vector.shape_cast %25 : vector<1xf32> to vector<1x1x1xf32>
    %27 = vector.extract %26[0, 0, 0] : f32 from vector<1x1x1xf32>
    %28 = tpu.iota {dimensions = array<i32: 1>} : vector<1x8x128xi32>
    %c4_i32 = arith.constant 4 : i32
    %29 = vector.broadcast %c4_i32 : i32 to vector<1x8x128xi32>
    %30 = arith.cmpi slt, %28, %29 : vector<1x8x128xi32>
    %31 = vector.broadcast %21 : f32 to vector<1x8x128xf32>
    %32 = vector.broadcast %27 : f32 to vector<1x8x128xf32>
    %33 = arith.select %30, %31, %32 : vector<1x8x128xi1>, vector<1x8x128xf32>
    %c0_9 = arith.constant 0 : index
    %c0_10 = arith.constant 0 : index
    %c0_11 = arith.constant 0 : index
    %34 = vector.load %arg3[%c0_9, %c0_10, %c0_11] : memref<1x8x128xf32, #tpu.memory_space<vmem>>, vector<1x8x128xf32>
    tpu.vector_store %arg3[%c0_9, %c0_10, %c0_11], %33 {strides = array<i32>} : memref<1x8x128xf32, #tpu.memory_space<vmem>>, vector<1x8x128xf32>,
    return
  }
  func.func @transform_0(%arg0: i32) -> (i32, i32) {
    %c0_i32 = arith.constant 0 : i32
    %c0_i32_0 = arith.constant 0 : i32
    return %arg0, %c0_i32 : i32, i32
  }
  func.func @transform_1(%arg0: i32) -> (i32, i32) {
    %c0_i32 = arith.constant 0 : i32
    %c0_i32_0 = arith.constant 0 : i32
    return %arg0, %c0_i32 : i32, i32
  }
  func.func @transform_2(%arg0: i32) -> (i32, i32, i32) {
    %c0_i32 = arith.constant 0 : i32
    %c0_i32_0 = arith.constant 0 : i32
    %c0_i32_1 = arith.constant 0 : i32
    return %arg0, %c0_i32, %c0_i32_0 : i32, i32, i32
  }
}

</mosaic_0001>

<bundles_post_ra>
// kernel: tpu_custom_call.1
= control target key start
LH: loop header
LB: loop body
LE: loop exit
PB: predicated region body
PF: predicated region fallthrough
CT: control target
= control target key end

     0   :  { %7 = vsyncpa [#allocation3], 0  ;;  %s271_s0 = inlined_call_operand.hbm [shape: f32[16,128], index: 0, kind: input, shape index: {}]   ;;  %s272_s1 = inlined_call_operand.hbm [shape: f32[16,128], index: 1, kind: input, shape index: {}]   ;;  %s273_s2 = inlined_call_operand.hbm [shape: f32[1,8,128], index: 2, kind: output, shape index: {}]  }
   0x1   :  { %8 = vsyncpa [#allocation6], 0 }
   0x2   :  { %9 = vsyncpa [#allocation4], 0  ;;  %s215_s9 = smov [#allocation2]   ;;  %s143_s13 = scalar_lea.hbm %s271_s0, 256 }
   0x3   :  { %s15_s10 = sshll.u32 %s215_s9, 4  ;;  %p144_p0 = scmp.ne.s32.totalorder %s271_s0, %s143_s13  ;;  %s16_s10 = int_to_ptr.vmem [resolvable:$true] %s15_s10 }
   0x4   :  { %p147_p1 = scmp.lt.u32.totalorder %s143_s13, %s271_s0 }
   0x6   :  { %p149_p2 = pnand %p147_p1, %p144_p0 }
   0x8   :  { %152 = shalt.err (!%p149_p2)
}
   0x9   :  { %s153_s18 = scalar_lea.vmem %s16_s10, 256  ;;  %p158_p4 = scmp.lt.s32.totalorder %s16_s10, %s16_s10 }
   0xa   :  { %p154_p3 = scmp.ne.s32.totalorder %s16_s10, %s153_s18  ;;  %p159_p5 = scmp.lt.s32.totalorder %s153_s18, %s153_s18 }
   0xc   :  { %p160_p6 = por %p159_p5, %p158_p4 }
   0xe   :  { %p161_p7 = pnand %p160_p6, %p154_p3 }
  0x10   :  { %164 = shalt.err (!%p161_p7)
}
  0x11   :  { %s216_s19 = smov 128   ;;  %s217_s20 = smov 8  }
  0x12   :  { %21 = dma.hbm_to_vmem [thread:$0]  %s271_s0, 256, %s16_s10, [#allocation3], %s216_s19, %s216_s19, %s217_s20  }
  0x13   :  { %s218_s23 = smov [#allocation5]   ;;  %s165_s27 = scalar_lea.hbm %s272_s1, 256 }
  0x14   :  { %s27_s24 = sshll.u32 %s218_s23, 4  ;;  %p166_p8 = scmp.ne.s32.totalorder %s272_s1, %s165_s27  ;;  %s28_s24 = int_to_ptr.vmem [resolvable:$true] %s27_s24 }
  0x15   :  { %p169_p9 = scmp.lt.u32.totalorder %s165_s27, %s272_s1 }
  0x17   :  { %p171_p10 = pnand %p169_p9, %p166_p8 }
  0x19   :  { %174 = shalt.err (!%p171_p10)
}
  0x1a   :  { %s175_s4 = scalar_lea.vmem %s28_s24, 256  ;;  %p180_p12 = scmp.lt.s32.totalorder %s28_s24, %s28_s24 }
  0x1b   :  { %p176_p11 = scmp.ne.s32.totalorder %s28_s24, %s175_s4  ;;  %p181_p13 = scmp.lt.s32.totalorder %s175_s4, %s175_s4 }
  0x1d   :  { %p182_p0 = por %p181_p13, %p180_p12 }
  0x1f   :  { %p183_p1 = pnand %p182_p0, %p176_p11 }
  0x21   :  { %186 = shalt.err (!%p183_p1)
}
  0x22   :  { %33 = dma.hbm_to_vmem [thread:$0]  %s272_s1, 256, %s28_s24, [#allocation6], %s216_s19, %s216_s19, %s217_s20  }
  0x23   :  { %209 = dma.done.wait [#allocation3], 256  }
  0x24   :  { %210 = vsyncadd [#allocation3], 4294967040 }
  0x25   :  { %211 = dma.done.wait [#allocation6], 256  }
  0x26   :  { %212 = vsyncadd [#allocation6], 4294967040  ;;  %v40_v0 = vld [vmem:[#allocation2] sm:$0xff]  ;;  %v41_v1 = vld [vmem:[#allocation2 + $0x8] sm:$0xff]  ;;  %vm74_vm0 = vcmask 7168   ;;  %v103_v50 = vlaneseq  ;;  %s219_s6 = smov [#allocation7]  }
  0x27   :  { %44 = vmax.xlane.f32.xlu0 %v40_v0  ;;  %v42_v13 = vld [vmem:[#allocation5] sm:$0xff]  ;;  %v43_v18 = vld [vmem:[#allocation5 + $0x8] sm:$0xff]  ;;  %s116_s7 = sshll.u32 %s219_s6, 4  ;;  %s117_s7 = int_to_ptr.vmem [resolvable:$true] %s116_s7 }
  0x28   :  { %v66_v16 = vsub.f32 0.0, %v42_v13  ;;  %v67_v23 = vsub.f32 0.0, %v43_v18  ;;  %v104_v51 = vshrl.u32 %v103_v50, 7  ;;  %s187_s9 = scalar_lea.vmem %s117_s7, 128  ;;  %p192_p3 = scmp.lt.s32.totalorder %s117_s7, %s117_s7 }
  0x29   :  { %p188_p2 = scmp.ne.s32.totalorder %s117_s7, %s187_s9  ;;  %p193_p4 = scmp.lt.s32.totalorder %s187_s9, %s187_s9 }
  0x2a   :  { %vm105_vm1 = vcmp.lt.s32.totalorder %v104_v51, 4 }
  0x2b   :  { %46 = vmax.xlane.f32.xlu0 %v41_v1  ;;  %p194_p5 = por %p193_p4, %p192_p3 }
  0x2d   :  { %p195_p6 = pnand %p194_p5, %p188_p2 }
  0xb4   :  { %v45_v2 = vpop.xlane.xlu0 %44 }
  0xb5   :  { %v48_v3 = vsub.f32 %v40_v0, %v45_v2 }
  0xb7   :  { %v50_v4 = vmul.f32 1.442695, %v48_v3 }
  0xb8   :  { %v47_v5 = vpop.xlane.xlu0 %46 }
  0xb9   :  { %v49_v6 = vsub.f32 %v41_v1, %v47_v5  ;;  %135 = vpow2.f32 %v50_v4 }
  0xbb   :  { %v52_v7 = vmul.f32 1.442695, %v49_v6 }
  0xbd   :  { %137 = vpow2.f32 %v52_v7 }
  0xc3   :  { %v136_v8 = vpop.eup %135 }
  0xc4   :  { %54 = vadd.xlane.f32.xlu1 %v136_v8 }
  0xc7   :  { %v138_v9 = vpop.eup %137 }
  0xc8   :  { %56 = vadd.xlane.f32.xlu1 %v138_v9 }
 0x151   :  { %v55_v10 = vpop.xlane.xlu1 %54 }
 0x152   :  { %139 = vlog2.f32 %v55_v10 }
 0x155   :  { %v57_v11 = vpop.xlane.xlu1 %56 }
 0x156   :  { %141 = vlog2.f32 %v57_v11 }
 0x15c   :  { %v140_v12 = vpop.eup %139 }
 0x15d   :  { %v59_v14 = vmul.f32 0.6931472, %v140_v12 }
 0x15f   :  { %v62_v15 = vadd.f32 %v59_v14, %v45_v2 }
 0x160   :  { %v142_v17 = vpop.eup %141 }
 0x161   :  { %v61_v19 = vmul.f32 0.6931472, %v142_v17  ;;  %v64_v20 = vsub.f32 %v40_v0, %v62_v15 }
 0x163   :  { %v63_v21 = vadd.f32 %v61_v19, %v47_v5  ;;  %v68_v22 = vmul.f32 %v66_v16, %v64_v20 }
 0x165   :  { %70 = vadd.xlane.f32.xlu0 %v68_v22  ;;  %v65_v24 = vsub.f32 %v41_v1, %v63_v21 }
 0x167   :  { %v69_v25 = vmul.f32 %v67_v23, %v65_v24 }
 0x169   :  { %72 = vadd.xlane.f32.xlu1 %v69_v25  ;;  %87 = vadd.xlane.f32.xlu0 %v42_v13 }
 0x16d   :  { %89 = vadd.xlane.f32.xlu1 %v43_v18 }
 0x1f2   :  { %v71_v26 = vpop.xlane.xlu0 %70 }
 0x1f3   :  { %v75_v29 = vsel %vm74_vm0, %v71_v26, 0.0 }
 0x1f6   :  { %v73_v27 = vpop.xlane.xlu1 %72  ;;  %v88_v28 = vpop.xlane.xlu0 %87 }
 0x1f7   :  { %v76_v30 = vsel %vm74_vm0, %v73_v27, 0.0  ;;  %v91_v32 = vsel %vm74_vm0, %v88_v28, 0.0 }
 0x1f8   :  { %v77_v31 = vadd.f32 %v76_v30, %v75_v29 }
 0x1fa   :  { %v90_v33 = vpop.xlane.xlu1 %89  ;;  %78 = vadd.xlane.f32.xlu0 %v77_v31 }
 0x1fb   :  { %v92_v34 = vsel %vm74_vm0, %v90_v33, 0.0 }
 0x1fc   :  { %v93_v35 = vadd.f32 %v92_v34, %v91_v32 }
 0x1fe   :  { %94 = vadd.xlane.f32.xlu1 %v93_v35 }
 0x287   :  { %v79_v36 = vpop.xlane.xlu0 %78 }
 0x288   :  { %v80_v37 = vrot.slane %v79_v36, 4 }
 0x28a   :  { %v81_v38 = vadd.f32 %v80_v37, %v79_v36 }
 0x28b   :  { %v95_v39 = vpop.xlane.xlu1 %94 }
 0x28c   :  { %v82_v40 = vrot.slane %v81_v38, 2  ;;  %v96_v41 = vrot.slane %v95_v39, 4 }
 0x28e   :  { %v97_v42 = vadd.f32 %v96_v41, %v95_v39  ;;  %v83_v43 = vadd.f32 %v82_v40, %v81_v38 }
 0x290   :  { %v98_v44 = vrot.slane %v97_v42, 2  ;;  %v84_v45 = vrot.slane %v83_v43, 1 }
 0x292   :  { %v99_v46 = vadd.f32 %v98_v44, %v97_v42  ;;  %v85_v47 = vadd.f32 %v84_v45, %v83_v43 }
 0x294   :  { %126 = vpush %v85_v47  ;;  %v100_v48 = vrot.slane %v99_v46, 1 }
 0x296   :  { %v101_v49 = vadd.f32 %v100_v48, %v99_v46 }
 0x298   :  { %128 = vpush %v101_v49 }
 0x2c5   :  { %s127_s1 = spop %126 }
 0x2c6   :  { %v106_v52 = vstv %s127_s1 }
 0x2c9   :  { %s129_s8 = spop %128 }
 0x2ca   :  { %v107_v53 = vstv %s129_s8 }
 0x2cb   :  { %v108_v54 = vsel %vm105_vm1, %v106_v52, %v107_v53 }
 0x2cc   :  { %109 = vst [vmem:[#allocation7] sm:$0xff] %v108_v54 }
 0x2cd   :  { %198 = shalt.err (!%p195_p6)
}
 0x2ce   :  { %s199_s12 = scalar_lea.hbm %s273_s2, 128 }
 0x2cf   :  { %p200_p7 = scmp.ne.s32.totalorder %s273_s2, %s199_s12  ;;  %p203_p8 = scmp.lt.u32.totalorder %s199_s12, %s273_s2 }
 0x2d1   :  { %p205_p9 = pnand %p203_p8, %p200_p7 }
 0x2d3   :  { %208 = shalt.err (!%p205_p9)
}
 0x2d4   :  { %119 = dma.vmem_to_hbm [thread:$0]  %s117_s7, 128, %s273_s2, [#allocation4]  }
 0x2d5   :  { %213 = dma.done.wait [#allocation4], 128  }
 0x2d6   :  { %214 = vsyncadd [#allocation4], 4294967168 }
 0x2d7   :  { %123 = vsyncpa [#allocation3], 1 }
 0x2d8   :  { %124 = vsyncpa [#allocation6], 1 }
 0x2d9   :  { %125 = vsyncpa [#allocation4], 1 }

</bundles_post_ra>
